<compile_context>
chip_gen: v6e
topology: v6e:2x2x1
jax: 0.10.0
libtpu: 0.0.40
codegen_flags: <defaults>
</compile_context>

<pallas_src>
from functools import partial

import jax
import jax.numpy as jnp
import numpy as np
from jax.experimental import pallas as pl
from jax.experimental.pallas import tpu as pltpu


def _tade_kernel(x_ref, mean_ref, rstd_ref, c_pad_ref,
                 w_aux_ref, b_aux_ref, w_gate_ref, b_gate_ref,
                 y_ref, c_out_ref, cbuf, *, K, pad, Cin, Tup):
    # ---- InstanceNorm with hoisted stats (scale/shift only) -----------------
    xn = (x_ref[0].astype(jnp.float32) - mean_ref[0]) * rstd_ref[0]   # (Cin, Tup)

    # ---- aux_conv: one deep-contraction bf16 matmul over stacked taps -------
    # taps_a[k*Caux_p + ci, t] = c_pad[ci, t + k]  (c_pad already 'same'-padded)
    taps_a = jnp.concatenate(
        [c_pad_ref[0, :, k:k + Tup] for k in range(K)], axis=0)       # (K*Caux_p, Tup) bf16
    c_val = jnp.dot(w_aux_ref[...], taps_a,
                    preferred_element_type=jnp.float32) + b_aux_ref[...]  # (Cin, Tup) f32
    c_out_ref[0] = c_val.astype(c_out_ref.dtype)

    # ---- gated_conv: pad c' into a small scratch (zero only the halo) -------
    if pad > 0:
        cbuf[:, :pad] = jnp.zeros((Cin, pad), cbuf.dtype)
        cbuf[:, pad + Tup:pad + Tup + pad] = jnp.zeros((Cin, pad), cbuf.dtype)
    cbuf[:, pad:pad + Tup] = c_val.astype(cbuf.dtype)
    taps_g = jnp.concatenate(
        [cbuf[:, k:k + Tup] for k in range(K)], axis=0)               # (K*Cin, Tup) bf16
    g = jnp.dot(w_gate_ref[...], taps_g,
                preferred_element_type=jnp.float32) + b_gate_ref[...]  # (2*Cin, Tup) f32

    # ---- y = cg1 * upsample(norm(x)) + cg2 ----------------------------------
    y_ref[0] = (g[:Cin] * xn + g[Cin:]).astype(y_ref.dtype)


def tade_layer(x, c, w_aux, b_aux, w_gate, b_gate, *,
               kernel_size=9, upsample_factor=2, eps=1e-5):
    """x: (B, Cin, T) f32; c: (B, Caux, T') f32. Returns (y, c') both (B, Cin, 2T) f32."""
    B, Cin, T = x.shape
    _, Caux, Tc = c.shape
    K = kernel_size
    pad = (K - 1) // 2
    up = upsample_factor
    Tup = Tc * up
    assert T * up == Tup, "T and T' must imply matching upsampled lengths"

    # --- InstanceNorm stats hoisted out of the kernel (commute with nearest x2)
    mean = jnp.mean(x, axis=-1, keepdims=True)                          # (B, Cin, 1)
    var = jnp.mean(jnp.square(x - mean), axis=-1, keepdims=True)
    rstd = jax.lax.rsqrt(var + eps)

    # --- glue (plain XLA): nearest upsample, 'same' zero pad, bf16 casts ------
    x_up = jnp.repeat(x, up, axis=-1).astype(jnp.bfloat16)              # (B, Cin, Tup)

    # pad aux channels to a multiple of 16 (bf16 sublane packing) with zeros
    Caux_p = ((Caux + 15) // 16) * 16
    c_p = jnp.pad(c, ((0, 0), (0, Caux_p - Caux), (0, 0)))
    w_aux_p = jnp.pad(w_aux, ((0, 0), (0, Caux_p - Caux), (0, 0)))
    c_up = jnp.repeat(c_p, up, axis=-1)
    c_pad = jnp.pad(c_up, ((0, 0), (0, 0), (pad, pad))).astype(jnp.bfloat16)  # (B, Caux_p, Tup+K-1)

    # stack conv weights (Cout, Cin_w, K) -> (Cout, K*Cin_w) so each conv is one matmul
    w_aux_s = jnp.transpose(w_aux_p, (0, 2, 1)).reshape(Cin, K * Caux_p).astype(jnp.bfloat16)
    w_gate_s = jnp.transpose(w_gate, (0, 2, 1)).reshape(2 * Cin, K * Cin).astype(jnp.bfloat16)
    b_aux_2 = b_aux.reshape(Cin, 1).astype(jnp.float32)
    b_gate_2 = b_gate.reshape(2 * Cin, 1).astype(jnp.float32)

    kernel = partial(_tade_kernel, K=K, pad=pad, Cin=Cin, Tup=Tup)

    y, c_out = pl.pallas_call(
        kernel,
        out_shape=(jax.ShapeDtypeStruct((B, Cin, Tup), jnp.float32),
                   jax.ShapeDtypeStruct((B, Cin, Tup), jnp.float32)),
        grid_spec=pltpu.PrefetchScalarGridSpec(
            num_scalar_prefetch=0,
            grid=(B,),
            in_specs=[
                pl.BlockSpec((1, Cin, Tup), lambda b: (b, 0, 0)),              # x_up (bf16)
                pl.BlockSpec((1, Cin, 1), lambda b: (b, 0, 0)),                # mean (f32)
                pl.BlockSpec((1, Cin, 1), lambda b: (b, 0, 0)),                # rstd (f32)
                pl.BlockSpec((1, Caux_p, Tup + K - 1), lambda b: (b, 0, 0)),   # c_pad (bf16)
                pl.BlockSpec((Cin, K * Caux_p), lambda b: (0, 0)),             # w_aux stacked
                pl.BlockSpec((Cin, 1), lambda b: (0, 0)),                      # b_aux
                pl.BlockSpec((2 * Cin, K * Cin), lambda b: (0, 0)),            # w_gate stacked
                pl.BlockSpec((2 * Cin, 1), lambda b: (0, 0)),                  # b_gate
            ],
            out_specs=(pl.BlockSpec((1, Cin, Tup), lambda b: (b, 0, 0)),
                       pl.BlockSpec((1, Cin, Tup), lambda b: (b, 0, 0))),
            scratch_shapes=[pltpu.VMEM((Cin, Tup + K - 1), jnp.bfloat16)],
        ),
        compiler_params=pltpu.CompilerParams(
            dimension_semantics=("parallel",)),
    )(x_up, mean, rstd, c_pad, w_aux_s, b_aux_2, w_gate_s, b_gate_2)
    return y, c_out


def tade_layer_ref(x, c, w_aux, b_aux, w_gate, b_gate, *,
                   kernel_size=9, upsample_factor=2, eps=1e-5):
    """Pure-JAX f32 reference mirroring the PyTorch forward."""
    K = kernel_size
    pad = (K - 1) // 2
    Cin = x.shape[1]
    mean = x.mean(-1, keepdims=True)
    var = ((x - mean) ** 2).mean(-1, keepdims=True)
    xn = (x - mean) / jnp.sqrt(var + eps)
    x_up = jnp.repeat(xn, upsample_factor, axis=-1)
    c_up = jnp.repeat(c, upsample_factor, axis=-1)
    dn = ('NCH', 'OIH', 'NCH')
    cc = jax.lax.conv_general_dilated(c_up, w_aux, (1,), [(pad, pad)],
                                      dimension_numbers=dn) + b_aux[None, :, None]
    cg = jax.lax.conv_general_dilated(cc, w_gate, (1,), [(pad, pad)],
                                      dimension_numbers=dn) + b_gate[None, :, None]
    cg1, cg2 = cg[:, :Cin], cg[:, Cin:]
    return cg1 * x_up + cg2, cc


if __name__ == "__main__":
    # Small deterministic shapes; T=64 so Tup=128 -> lane-dense output stores.
    B, Cin, Caux, T, K = 2, 16, 24, 64, 9

    key = jax.random.PRNGKey(0)
    kx, kc, kwa, kba, kwg, kbg = jax.random.split(key, 6)
    x = jax.random.normal(kx, (B, Cin, T), jnp.float32)
    c = jax.random.normal(kc, (B, Caux, T), jnp.float32)
    # Conv1d weight layout: (Cout, Cin, K).
    w_aux = 0.02 * jax.random.normal(kwa, (Cin, Caux, K), jnp.float32)
    b_aux = 0.01 * jax.random.normal(kba, (Cin,), jnp.float32)
    w_gate = 0.02 * jax.random.normal(kwg, (2 * Cin, Cin, K), jnp.float32)
    b_gate = 0.01 * jax.random.normal(kbg, (2 * Cin,), jnp.float32)

    y, c_out = tade_layer(x, c, w_aux, b_aux, w_gate, b_gate,
                          kernel_size=K, upsample_factor=2)
    jax.block_until_ready((y, c_out))

    y_ref, c_ref = tade_layer_ref(x, c, w_aux, b_aux, w_gate, b_gate,
                                  kernel_size=K, upsample_factor=2)
    # bf16 MXU operands (f32 accumulation) -> slightly looser tolerance than pure f32.
    np.testing.assert_allclose(np.asarray(c_out), np.asarray(c_ref), rtol=2e-2, atol=2e-2)
    np.testing.assert_allclose(np.asarray(y), np.asarray(y_ref), rtol=2e-2, atol=2e-2)

    print("KERNEL_OK")
</pallas_src>

<mosaic_0001>
module attributes {stable_mosaic.version = 11 : i64} {
  func.func @_tade_kernel(%arg0: i32, %arg1: memref<1x16x128xbf16, #tpu.memory_space<vmem>>, %arg2: memref<1x16x1xf32, #tpu.memory_space<vmem>>, %arg3: memref<1x16x1xf32, #tpu.memory_space<vmem>>, %arg4: memref<1x32x136xbf16, #tpu.memory_space<vmem>>, %arg5: memref<16x288xbf16, #tpu.memory_space<vmem>>, %arg6: memref<16x1xf32, #tpu.memory_space<vmem>>, %arg7: memref<32x144xbf16, #tpu.memory_space<vmem>>, %arg8: memref<32x1xf32, #tpu.memory_space<vmem>>, %arg9: memref<1x16x128xf32, #tpu.memory_space<vmem>>, %arg10: memref<1x16x128xf32, #tpu.memory_space<vmem>>, %arg11: memref<16x136xbf16, #tpu.memory_space<vmem>>) attributes {dimension_semantics = [#tpu.dimension_semantics<parallel>], iteration_bounds = array<i64: 2>, scalar_prefetch = 0 : i64, scratch_operands = 1 : i64, tpu.core_type = #tpu.core_type<tc>, window_params = [{transform_indices = @transform_0, window_bounds = array<i64: 1, 16, 128>}, {transform_indices = @transform_1, window_bounds = array<i64: 1, 16, 1>}, {transform_indices = @transform_2, window_bounds = array<i64: 1, 16, 1>}, {transform_indices = @transform_3, window_bounds = array<i64: 1, 32, 136>}, {pipeline_mode = #tpu.pipeline_mode<synchronous>, transform_indices = @transform_4, window_bounds = array<i64: 16, 288>}, {pipeline_mode = #tpu.pipeline_mode<synchronous>, transform_indices = @transform_5, window_bounds = array<i64: 16, 1>}, {pipeline_mode = #tpu.pipeline_mode<synchronous>, transform_indices = @transform_6, window_bounds = array<i64: 32, 144>}, {pipeline_mode = #tpu.pipeline_mode<synchronous>, transform_indices = @transform_7, window_bounds = array<i64: 32, 1>}, {transform_indices = @transform_8, window_bounds = array<i64: 1, 16, 128>}, {transform_indices = @transform_9, window_bounds = array<i64: 1, 16, 128>}]} {
    %c0 = arith.constant 0 : index
    %c0_0 = arith.constant 0 : index
    %c0_1 = arith.constant 0 : index
    %0 = vector.load %arg1[%c0, %c0_0, %c0_1] : memref<1x16x128xbf16, #tpu.memory_space<vmem>>, vector<1x16x128xbf16>
    %1 = vector.shape_cast %0 : vector<1x16x128xbf16> to vector<16x128xbf16>
    %2 = arith.extf %1 : vector<16x128xbf16> to vector<16x128xf32>
    %c0_2 = arith.constant 0 : index
    %c0_3 = arith.constant 0 : index
    %c0_4 = arith.constant 0 : index
    %3 = vector.load %arg2[%c0_2, %c0_3, %c0_4] : memref<1x16x1xf32, #tpu.memory_space<vmem>>, vector<1x16x1xf32>
    %4 = vector.shape_cast %3 : vector<1x16x1xf32> to vector<16x1xf32>
    %5 = vector.broadcast %4 : vector<16x1xf32> to vector<16x128xf32>
    %6 = arith.subf %2, %5 : vector<16x128xf32>
    %c0_5 = arith.constant 0 : index
    %c0_6 = arith.constant 0 : index
    %c0_7 = arith.constant 0 : index
    %7 = vector.load %arg3[%c0_5, %c0_6, %c0_7] : memref<1x16x1xf32, #tpu.memory_space<vmem>>, vector<1x16x1xf32>
    %8 = vector.shape_cast %7 : vector<1x16x1xf32> to vector<16x1xf32>
    %9 = vector.broadcast %8 : vector<16x1xf32> to vector<16x128xf32>
    %10 = arith.mulf %6, %9 : vector<16x128xf32>
    %c0_8 = arith.constant 0 : index
    %c0_9 = arith.constant 0 : index
    %c0_10 = arith.constant 0 : index
    %11 = vector.load %arg4[%c0_8, %c0_9, %c0_10] : memref<1x32x136xbf16, #tpu.memory_space<vmem>>, vector<1x32x128xbf16>
    %12 = vector.shape_cast %11 : vector<1x32x128xbf16> to vector<32x128xbf16>
    %c0_11 = arith.constant 0 : index
    %c0_12 = arith.constant 0 : index
    %c1 = arith.constant 1 : index
    %13 = vector.load %arg4[%c0_11, %c0_12, %c1] : memref<1x32x136xbf16, #tpu.memory_space<vmem>>, vector<1x32x128xbf16>
    %14 = vector.shape_cast %13 : vector<1x32x128xbf16> to vector<32x128xbf16>
    %c0_13 = arith.constant 0 : index
    %c0_14 = arith.constant 0 : index
    %c2 = arith.constant 2 : index
    %15 = vector.load %arg4[%c0_13, %c0_14, %c2] : memref<1x32x136xbf16, #tpu.memory_space<vmem>>, vector<1x32x128xbf16>
    %16 = vector.shape_cast %15 : vector<1x32x128xbf16> to vector<32x128xbf16>
    %c0_15 = arith.constant 0 : index
    %c0_16 = arith.constant 0 : index
    %c3 = arith.constant 3 : index
    %17 = vector.load %arg4[%c0_15, %c0_16, %c3] : memref<1x32x136xbf16, #tpu.memory_space<vmem>>, vector<1x32x128xbf16>
    %18 = vector.shape_cast %17 : vector<1x32x128xbf16> to vector<32x128xbf16>
    %c0_17 = arith.constant 0 : index
    %c0_18 = arith.constant 0 : index
    %c4 = arith.constant 4 : index
    %19 = vector.load %arg4[%c0_17, %c0_18, %c4] : memref<1x32x136xbf16, #tpu.memory_space<vmem>>, vector<1x32x128xbf16>
    %20 = vector.shape_cast %19 : vector<1x32x128xbf16> to vector<32x128xbf16>
    %c0_19 = arith.constant 0 : index
    %c0_20 = arith.constant 0 : index
    %c5 = arith.constant 5 : index
    %21 = vector.load %arg4[%c0_19, %c0_20, %c5] : memref<1x32x136xbf16, #tpu.memory_space<vmem>>, vector<1x32x128xbf16>
    %22 = vector.shape_cast %21 : vector<1x32x128xbf16> to vector<32x128xbf16>
    %c0_21 = arith.constant 0 : index
    %c0_22 = arith.constant 0 : index
    %c6 = arith.constant 6 : index
    %23 = vector.load %arg4[%c0_21, %c0_22, %c6] : memref<1x32x136xbf16, #tpu.memory_space<vmem>>, vector<1x32x128xbf16>
    %24 = vector.shape_cast %23 : vector<1x32x128xbf16> to vector<32x128xbf16>
    %c0_23 = arith.constant 0 : index
    %c0_24 = arith.constant 0 : index
    %c7 = arith.constant 7 : index
    %25 = vector.load %arg4[%c0_23, %c0_24, %c7] : memref<1x32x136xbf16, #tpu.memory_space<vmem>>, vector<1x32x128xbf16>
    %26 = vector.shape_cast %25 : vector<1x32x128xbf16> to vector<32x128xbf16>
    %c0_25 = arith.constant 0 : index
    %c0_26 = arith.constant 0 : index
    %c8 = arith.constant 8 : index
    %27 = vector.load %arg4[%c0_25, %c0_26, %c8] : memref<1x32x136xbf16, #tpu.memory_space<vmem>>, vector<1x32x128xbf16>
    %28 = vector.shape_cast %27 : vector<1x32x128xbf16> to vector<32x128xbf16>
    %29 = tpu.concatenate %12, %14, %16, %18, %20, %22, %24, %26, %28 in 0 : vector<32x128xbf16>, vector<32x128xbf16>, vector<32x128xbf16>, vector<32x128xbf16>, vector<32x128xbf16>, vector<32x128xbf16>, vector<32x128xbf16>, vector<32x128xbf16>, vector<32x128xbf16> -> vector<288x128xbf16>
    %c0_27 = arith.constant 0 : index
    %c0_28 = arith.constant 0 : index
    %30 = vector.load %arg5[%c0_27, %c0_28] : memref<16x288xbf16, #tpu.memory_space<vmem>>, vector<16x288xbf16>
    %cst = arith.constant dense<0.000000e+00> : vector<16x128xf32>
    %31 = tpu.matmul %30, %29, %cst {dimension_numbers = #tpu.dot_dimension_numbers<[1], [0], [0], [1], [0, 0, 1, 1], [], []>} : vector<16x288xbf16>, vector<288x128xbf16>, vector<16x128xf32> -> vector<16x128xf32>
    %c0_29 = arith.constant 0 : index
    %c0_30 = arith.constant 0 : index
    %32 = vector.load %arg6[%c0_29, %c0_30] : memref<16x1xf32, #tpu.memory_space<vmem>>, vector<16x1xf32>
    %33 = vector.broadcast %32 : vector<16x1xf32> to vector<16x128xf32>
    %34 = arith.addf %31, %33 : vector<16x128xf32>
    %c0_31 = arith.constant 0 : index
    %c0_32 = arith.constant 0 : index
    %c0_33 = arith.constant 0 : index
    %35 = vector.load %arg10[%c0_31, %c0_32, %c0_33] : memref<1x16x128xf32, #tpu.memory_space<vmem>>, vector<1x16x128xf32>
    %36 = vector.shape_cast %35 : vector<1x16x128xf32> to vector<16x128xf32>
    %37 = vector.shape_cast %34 : vector<16x128xf32> to vector<1x16x128xf32>
    tpu.vector_store %arg10[%c0_31, %c0_32, %c0_33], %37 {strides = array<i32>} : memref<1x16x128xf32, #tpu.memory_space<vmem>>, vector<1x16x128xf32>,
    %cst_34 = arith.constant 0.000000e+00 : bf16
    %38 = vector.broadcast %cst_34 : bf16 to vector<16x4xbf16>
    %c0_35 = arith.constant 0 : index
    %c0_36 = arith.constant 0 : index
    %39 = vector.load %arg11[%c0_35, %c0_36] : memref<16x136xbf16, #tpu.memory_space<vmem>>, vector<16x4xbf16>
    tpu.vector_store %arg11[%c0_35, %c0_36], %38 {strides = array<i32>} : memref<16x136xbf16, #tpu.memory_space<vmem>>, vector<16x4xbf16>,
    %cst_37 = arith.constant 0.000000e+00 : bf16
    %40 = vector.broadcast %cst_37 : bf16 to vector<16x4xbf16>
    %c0_38 = arith.constant 0 : index
    %c132 = arith.constant 132 : index
    %41 = vector.load %arg11[%c0_38, %c132] : memref<16x136xbf16, #tpu.memory_space<vmem>>, vector<16x4xbf16>
    tpu.vector_store %arg11[%c0_38, %c132], %40 {strides = array<i32>} : memref<16x136xbf16, #tpu.memory_space<vmem>>, vector<16x4xbf16>,
    %42 = arith.truncf %34 : vector<16x128xf32> to vector<16x128xbf16>
    %c0_39 = arith.constant 0 : index
    %c4_40 = arith.constant 4 : index
    %43 = vector.load %arg11[%c0_39, %c4_40] : memref<16x136xbf16, #tpu.memory_space<vmem>>, vector<16x128xbf16>
    tpu.vector_store %arg11[%c0_39, %c4_40], %42 {strides = array<i32>} : memref<16x136xbf16, #tpu.memory_space<vmem>>, vector<16x128xbf16>,
    %c0_41 = arith.constant 0 : index
    %c0_42 = arith.constant 0 : index
    %44 = vector.load %arg11[%c0_41, %c0_42] : memref<16x136xbf16, #tpu.memory_space<vmem>>, vector<16x128xbf16>
    %c0_43 = arith.constant 0 : index
    %c1_44 = arith.constant 1 : index
    %45 = vector.load %arg11[%c0_43, %c1_44] : memref<16x136xbf16, #tpu.memory_space<vmem>>, vector<16x128xbf16>
    %c0_45 = arith.constant 0 : index
    %c2_46 = arith.constant 2 : index
    %46 = vector.load %arg11[%c0_45, %c2_46] : memref<16x136xbf16, #tpu.memory_space<vmem>>, vector<16x128xbf16>
    %c0_47 = arith.constant 0 : index
    %c3_48 = arith.constant 3 : index
    %47 = vector.load %arg11[%c0_47, %c3_48] : memref<16x136xbf16, #tpu.memory_space<vmem>>, vector<16x128xbf16>
    %c0_49 = arith.constant 0 : index
    %c4_50 = arith.constant 4 : index
    %48 = vector.load %arg11[%c0_49, %c4_50] : memref<16x136xbf16, #tpu.memory_space<vmem>>, vector<16x128xbf16>
    %c0_51 = arith.constant 0 : index
    %c5_52 = arith.constant 5 : index
    %49 = vector.load %arg11[%c0_51, %c5_52] : memref<16x136xbf16, #tpu.memory_space<vmem>>, vector<16x128xbf16>
    %c0_53 = arith.constant 0 : index
    %c6_54 = arith.constant 6 : index
    %50 = vector.load %arg11[%c0_53, %c6_54] : memref<16x136xbf16, #tpu.memory_space<vmem>>, vector<16x128xbf16>
    %c0_55 = arith.constant 0 : index
    %c7_56 = arith.constant 7 : index
    %51 = vector.load %arg11[%c0_55, %c7_56] : memref<16x136xbf16, #tpu.memory_space<vmem>>, vector<16x128xbf16>
    %c0_57 = arith.constant 0 : index
    %c8_58 = arith.constant 8 : index
    %52 = vector.load %arg11[%c0_57, %c8_58] : memref<16x136xbf16, #tpu.memory_space<vmem>>, vector<16x128xbf16>
    %53 = tpu.concatenate %44, %45, %46, %47, %48, %49, %50, %51, %52 in 0 : vector<16x128xbf16>, vector<16x128xbf16>, vector<16x128xbf16>, vector<16x128xbf16>, vector<16x128xbf16>, vector<16x128xbf16>, vector<16x128xbf16>, vector<16x128xbf16>, vector<16x128xbf16> -> vector<144x128xbf16>
    %c0_59 = arith.constant 0 : index
    %c0_60 = arith.constant 0 : index
    %54 = vector.load %arg7[%c0_59, %c0_60] : memref<32x144xbf16, #tpu.memory_space<vmem>>, vector<32x144xbf16>
    %cst_61 = arith.constant dense<0.000000e+00> : vector<32x128xf32>
    %55 = tpu.matmul %54, %53, %cst_61 {dimension_numbers = #tpu.dot_dimension_numbers<[1], [0], [0], [1], [0, 0, 1, 1], [], []>} : vector<32x144xbf16>, vector<144x128xbf16>, vector<32x128xf32> -> vector<32x128xf32>
    %c0_62 = arith.constant 0 : index
    %c0_63 = arith.constant 0 : index
    %56 = vector.load %arg8[%c0_62, %c0_63] : memref<32x1xf32, #tpu.memory_space<vmem>>, vector<32x1xf32>
    %57 = vector.broadcast %56 : vector<32x1xf32> to vector<32x128xf32>
    %58 = arith.addf %55, %57 : vector<32x128xf32>
    %59 = vector.extract_strided_slice %58 {offsets = [0, 0], sizes = [16, 128], strides = [1, 1]} : vector<32x128xf32> to vector<16x128xf32>
    %60 = arith.mulf %59, %10 : vector<16x128xf32>
    %61 = vector.extract_strided_slice %58 {offsets = [16, 0], sizes = [16, 128], strides = [1, 1]} : vector<32x128xf32> to vector<16x128xf32>
    %62 = arith.addf %60, %61 : vector<16x128xf32>
    %c0_64 = arith.constant 0 : index
    %c0_65 = arith.constant 0 : index
    %c0_66 = arith.constant 0 : index
    %63 = vector.load %arg9[%c0_64, %c0_65, %c0_66] : memref<1x16x128xf32, #tpu.memory_space<vmem>>, vector<1x16x128xf32>
    %64 = vector.shape_cast %63 : vector<1x16x128xf32> to vector<16x128xf32>
    %65 = vector.shape_cast %62 : vector<16x128xf32> to vector<1x16x128xf32>
    tpu.vector_store %arg9[%c0_64, %c0_65, %c0_66], %65 {strides = array<i32>} : memref<1x16x128xf32, #tpu.memory_space<vmem>>, vector<1x16x128xf32>,
    return
  }
  func.func @transform_0(%arg0: i32) -> (i32, i32, i32) {
    %c0_i32 = arith.constant 0 : i32
    %c0_i32_0 = arith.constant 0 : i32
    %c0_i32_1 = arith.constant 0 : i32
    return %arg0, %c0_i32, %c0_i32_0 : i32, i32, i32
  }
  func.func @transform_1(%arg0: i32) -> (i32, i32, i32) {
    %c0_i32 = arith.constant 0 : i32
    %c0_i32_0 = arith.constant 0 : i32
    %c0_i32_1 = arith.constant 0 : i32
    return %arg0, %c0_i32, %c0_i32_0 : i32, i32, i32
  }
  func.func @transform_2(%arg0: i32) -> (i32, i32, i32) {
    %c0_i32 = arith.constant 0 : i32
    %c0_i32_0 = arith.constant 0 : i32
    %c0_i32_1 = arith.constant 0 : i32
    return %arg0, %c0_i32, %c0_i32_0 : i32, i32, i32
  }
  func.func @transform_3(%arg0: i32) -> (i32, i32, i32) {
    %c0_i32 = arith.constant 0 : i32
    %c0_i32_0 = arith.constant 0 : i32
    %c0_i32_1 = arith.constant 0 : i32
    return %arg0, %c0_i32, %c0_i32_0 : i32, i32, i32
  }
  func.func @transform_4(%arg0: i32) -> (i32, i32) {
    %c0_i32 = arith.constant 0 : i32
    %c0_i32_0 = arith.constant 0 : i32
    %c0_i32_1 = arith.constant 0 : i32
    return %c0_i32, %c0_i32_0 : i32, i32
  }
  func.func @transform_5(%arg0: i32) -> (i32, i32) {
    %c0_i32 = arith.constant 0 : i32
    %c0_i32_0 = arith.constant 0 : i32
    %c0_i32_1 = arith.constant 0 : i32
    return %c0_i32, %c0_i32_0 : i32, i32
  }
  func.func @transform_6(%arg0: i32) -> (i32, i32) {
    %c0_i32 = arith.constant 0 : i32
    %c0_i32_0 = arith.constant 0 : i32
    %c0_i32_1 = arith.constant 0 : i32
    return %c0_i32, %c0_i32_0 : i32, i32
  }
  func.func @transform_7(%arg0: i32) -> (i32, i32) {
    %c0_i32 = arith.constant 0 : i32
    %c0_i32_0 = arith.constant 0 : i32
    %c0_i32_1 = arith.constant 0 : i32
    return %c0_i32, %c0_i32_0 : i32, i32
  }
  func.func @transform_8(%arg0: i32) -> (i32, i32, i32) {
    %c0_i32 = arith.constant 0 : i32
    %c0_i32_0 = arith.constant 0 : i32
    %c0_i32_1 = arith.constant 0 : i32
    return %arg0, %c0_i32, %c0_i32_0 : i32, i32, i32
  }
  func.func @transform_9(%arg0: i32) -> (i32, i32, i32) {
    %c0_i32 = arith.constant 0 : i32
    %c0_i32_0 = arith.constant 0 : i32
    %c0_i32_1 = arith.constant 0 : i32
    return %arg0, %c0_i32, %c0_i32_0 : i32, i32, i32
  }
}

</mosaic_0001>

<bundles_post_ra>
// kernel: tpu_custom_call.1
= control target key start
LH: loop header
LB: loop body
LE: loop exit
PB: predicated region body
PF: predicated region fallthrough
CT: control target
= control target key end

     0   :  { %15 = vsyncpa [#allocation4], 0  ;;  %s1822_s0 = inlined_call_operand.hbm [shape: bf16[2,16,128], index: 0, kind: input, shape index: {}]   ;;  %s1823_s1 = inlined_call_operand.vmem [shape: f32[2,16,1], index: 1, kind: input, shape index: {}]   ;;  %s1824_s2 = inlined_call_operand.vmem [shape: f32[2,16,1], index: 2, kind: input, shape index: {}]   ;;  %s1825_s3 = inlined_call_operand.vmem [shape: bf16[2,32,136], index: 3, kind: input, shape index: {}]   ;;  %s1826_s4 = inlined_call_operand.vmem [shape: bf16[16,288], index: 4, kind: input, shape index: {}]   ;;  %s1827_s5 = inlined_call_operand.vmem [shape: f32[16,1], index: 5, kind: input, shape index: {}]   ;;  %s1828_s6 = inlined_call_operand.vmem [shape: bf16[32,144], index: 6, kind: input, shape index: {}]   ;;  %s1829_s7 = inlined_call_operand.vmem [shape: f32[32,1], index: 7, kind: input, shape index: {}]   ;;  %s1830_s8 = inlined_call_operand.hbm [shape: f32[2,16,128], index: 8, kind: output, shape index: {0}]   ;;  %s1831_s9 = inlined_call_operand.hbm [shape: f32[2,16,128], index: 9, kind: output, shape index: {1}]  }
   0x1   :  { %17 = vsyncpa [#allocation4 + $0x1], 0 }
   0x2   :  { %18 = vsyncpa [#allocation5], 0 }
   0x3   :  { %20 = vsyncpa [#allocation5 + $0x1], 0 }
   0x4   :  { %21 = vsyncpa [#allocation8], 0 }
   0x5   :  { %23 = vsyncpa [#allocation8 + $0x1], 0  ;;  %s1466_s30 = smov 0   ;;  %s1468_s10 = smov 0  }
   0x6   :  { %s1470_s11 = smov 0   ;;  %s1472_s12 = smov 0  }
   0x7 LB: > { %1841 = sst [smem:[#allocation12_spill]] %s1391_s11  ;;  %s1487_s13 = sadd.s32 4294967295, %s1395_s12   ;;  %s1395_s12 = sphi %s1472_s12, %s1860_s12   ;;  %s1391_s11 = sphi %s1470_s11, %s1857_s11   ;;  %s1387_s10 = sphi %s1468_s10, %s1859_s10   ;;  %s1383_s30 = sphi %s1466_s30, %s1858_s30  }
   0x8   : > { %s1092_s14 = sadd.s32 4294967294, %s1395_s12   ;;  %s1491_s15 = sadd.s32 1, %s1395_s12  }
   0x9   : > { %s36_s16 = sadd.s32 1, %s1391_s11  ;;  %s33_s17 = ssub.s32 %s1395_s12, %s1491_s15 }
   0xa   : > { %p43_p0 = scmp.ne.s32.totalorder %s1391_s11, %s1387_s10  ;;  %p34_p1 = scmp.eq.s32.totalorder %s33_s17, 0 }
   0xb   : > { %p44_p2 = scmp.eq.s32.totalorder %s1395_s12, 0  ;;  %p49_p3 = scmp.ne.s32.totalorder %s1387_s10, %s1383_s30 }
   0xc   : > { %p50_p4 = scmp.eq.s32.totalorder %s1487_s13, 0  ;;  %p235_p7 = scmp.eq.s32.totalorder %s1487_s13, 1 }
   0xd   : > { %s1503_s18 = scalar_select %p34_p1, %s1391_s11, %s36_s16  }
   0xe   : > { %p1505_p5 = por %p44_p2, %p43_p0  ;;  %p1509_p6 = por %p50_p4, %p49_p3 }
   0xf   : > { %1842 = sst [smem:[#allocation13_spill]] %s1503_s18  ;;  %p241_p8 = scmp.eq.s32.totalorder %s1092_s14, 1 }
  0x10   : > { %s1844_s20 = scalar_select %p1509_p6, 1, 0 }
  0x11   : > { %p1199_p10 = scmp.lt.s32.totalorder %s1395_s12, 2  ;;  %p1516_p11 = por %p235_p7, %p43_p0 }
  0x12   : > { %p1520_p12 = por %p241_p8, %p49_p3  ;;  %s299_s23 = sand.u32 1, %s1391_s11  }
  0x13   : > { %s1845_s21 = scalar_select %p1516_p11, 1, 0 }
  0x14   : > { %s1846_s22 = scalar_select %p1520_p12, 1, 0 }
  0x15   : > { %s1137_s24 = sshll.u32 %s1395_s12, 7  ;;  %s1095_s25 = sshll.u32 %s299_s23, 3 }
  0x16   : > { %s1529_s28 = scalar_lea.hbm %s1822_s0, %s1137_s24  ;;  %s303_s29 = scalar_lea.vmem [#allocation3], %s1095_s25 }
  0x17   : > { %s310_s14 = sshll.u32 %s303_s29, 4  ;;  %p1533_p13 = pnand %p1199_p10, %p1505_p5  ;;  %s1537_s14 = int_to_ptr.vmem [resolvable:$true] %s310_s14 }
  0x18   : > { %s1539_s17 = scalar_lea.sflag [#allocation4], %s299_s23  ;;  %s1273_s18 = scalar_lea.hbm %s1529_s28, 128 }
  0x19   : > { %p1274_p0 = scmp.ne.s32.totalorder %s1529_s28, %s1273_s18  ;;  %p1275_p1 = pneg %p1533_p13 }
  0x1a   : > { %s1278_s25 = scalar_lea.hbm %s1822_s0, 256  ;;  %p1279_p4 = scmp.lt.s32.totalorder %s1529_s28, %s1822_s0 }
  0x1b   : > { %p1276_p2 = pnand %p1275_p1, %p1274_p0  ;;  %p1280_p5 = scmp.lt.s32.totalorder %s1278_s25, %s1273_s18 }
  0x1d   : > { %p1277_p3 = pneg %p1276_p2  ;;  %p1281_p7 = por %p1280_p5, %p1279_p4 }
  0x1f   : > { %p1282_p8 = pnand %p1281_p7, %p1277_p3 }
  0x21   : > { %1285 = shalt.err (!%p1282_p8)
}
  0x22   : > { %s1286_s23 = scalar_lea.vmem %s1537_s14, 128  ;;  %s1397_s29 = smov [#allocation3]  }
  0x23   : > { %p1287_p10 = scmp.ne.s32.totalorder %s1537_s14, %s1286_s23  ;;  %s1291_s11 = sshll.u32 %s1397_s29, 4  ;;  %s1292_s11 = int_to_ptr.vmem [resolvable:$false] %s1291_s11 }
  0x24   : > { %s1293_s24 = scalar_lea.vmem %s1292_s11, 256  ;;  %p1294_p2 = scmp.lt.s32.totalorder %s1537_s14, %s1292_s11 }
  0x25   : > { %p1289_p9 = pnand %p1287_p10, %p1275_p1  ;;  %p1295_p12 = scmp.lt.s32.totalorder %s1293_s24, %s1286_s23 }
  0x27   : > { %p1290_p0 = pneg %p1289_p9  ;;  %p1296_p11 = por %p1295_p12, %p1294_p2 }
  0x29   : > { %p1297_p6 = pnand %p1296_p11, %p1290_p0 }
  0x2b   : > { %1300 = shalt.err (!%p1297_p6)
}
  0x2c   : > { %s1398_s18 = smov 64   ;;  %s1399_s26 = smov 4  }
  0x2d   : > { %1191 = dma.hbm_to_vmem [thread:$0]  (!%p1533_p13), %s1529_s28, 128, %s1537_s14, %s1539_s17, %s1398_s18, %s1398_s18, %s1399_s26  }
  0x2e   : > { %p1098_p9 = scmp.ge.s32.totalorder %s1395_s12, 1  ;;  %p342_p1 = scmp.lt.s32.totalorder %s1395_s12, 3 }
  0x30   : > { %p343_p3 = pnand %p1098_p9, %p342_p1 }
  0x31   : > { %s1563_s11 = sand.u32 (!%p343_p3), 1, %s1387_s10   ;;  %p1848_p6 = scmp.ne.s32.totalorder (!%p343_p3), %s1844_s20, 0 }
  0x32   : > { %346 = sbr.rel (%p343_p3) target bundleno = 943 (0x3af), region = 52  ;;  %s1099_s25 = sshll.u32 (!%p343_p3), %s1563_s11, 3 }
  0x33   : > { %s349_s19 = scalar_lea.sflag (!%p343_p3), [#allocation4], %s1563_s11  ;;  %s1567_s27 = scalar_lea.vmem (!%p343_p3), [#allocation3], %s1099_s25 }
  0x37   : > { %1370 = dma.done.wait (%p1848_p6), %s349_s19, 128  }
  0x38   : > { %1372 = vsyncadd (%p1848_p6), %s349_s19, 4294967168  ;;  %p407_p11 = scmp.lt.s32.totalorder %s1487_s13, 1  ;;  %s1400_s29 = smov 125   ;;  %v1261_v4 = vld [vmem:[%s1826_s4 + $0x4] ss:$12 sps:$4 sm:$0xff]   ;;  %v1407_v5 = vmov 0  }
  0x39   : > { %s1401_s20 = smov 121   ;;  %s1402_s24 = smov 122   ;;  %662 = vmatprep.mubr.bf16.mxu0 %v1261_v4  ;;  %1249 = vset.pattern.permute.xlu0 %v1407_v5  ;;  %v599_v6 = vld [vmem:[%s1827_s5] sm:$0xff]  ;;  %v600_v7 = vld [vmem:[%s1827_s5 + $0x8] sm:$0xff]  ;;  %vm577_vm0 = vcmask 990208   ;;  %vm525_vm1 = vcmask 1022976  }
  0x3a   : > { %s1575_s28 = scalar_select %p407_p11, %s1487_s13, 1  ;;  %1250 = vset.pattern.permute.xlu1 %v1407_v5  ;;  %861 = vmatprep.subr.bf16.mxu1 %v1407_v5  ;;  %vm564_vm2 = vcmask 998400   ;;  %vm512_vm3 = vcmask 1031168   ;;  %vm551_vm4 = vcmask 1006592   ;;  %vm499_vm5 = vcmask 1039360  }
  0x3b   : > { %s1837_s18 = smov 126   ;;  %s1404_s26 = smov 123   ;;  %vm538_vm6 = vcmask 1014784   ;;  %v1259_v52 = vld [vmem:[%s1826_s4] ss:$12 sps:$4 sm:$0xff]   ;;  %vm590_vm7 = vcmask 982016  }
  0x3c   : > { %s1140_s14 = sshll.u32 %s1575_s28, 5  ;;  %s1835_s25 = smov 127   ;;  %v1409_v55 = vmov 0.0   ;;  %vm1410_vm8 = vmmov 0   ;;  %v1262_v60 = vld [vmem:[%s1826_s4 + $0x8] ss:$12 sps:$4 sm:$0xff]  }
  0x3d   : > { %s1581_s23 = scalar_lea.vmem %s1825_s3, %s1140_s14  ;;  %s1406_s16 = smov 124   ;;  %vm626_vm9 = vcmask 261120   ;;  %vm714_vm10 = vcmask 27648   ;;  %vm717_vm11 = vcmask 60448   ;;  %vm737_vm12 = vcmask 1043488  }
  0x3e   : > { %v1251_v0 = vld [vmem:[%s1581_s23 + $0x10] ss:$8 sps:$4 sm:$0xff]   ;;  %v1253_v1 = vld [vmem:[%s1581_s23 + $0x14] ss:$8 sps:$4 sm:$0xff]   ;;  %v1254_v2 = vld [vmem:[%s1581_s23 + $0x4] ss:$8 sps:$4 sm:$0xff]  }
  0x3f   : > { %521 = vrot.lane.b32.xlu1 %v1251_v0, %s1400_s29  ;;  %573 = vrot.lane.b32.xlu0 %v1251_v0, %s1401_s20  ;;  %v1256_v3 = vld [vmem:[%s1581_s23] ss:$8 sps:$4 sm:$0xff]   ;;  %s1408_s17 = smov 120   ;;  %v1257_v44 = vld [vmem:[%s1581_s23 + $0x10] ss:$8 sps:$4 sm:$0xff]   ;;  %s1840_s14 = sshll.u32 %s1563_s11, 4 }
  0x40   : > { %v1258_v48 = vld [vmem:[%s1581_s23] ss:$8 sps:$4 sm:$0xff]   ;;  %715 = vst.msk [vmem:[#allocation2] sm:$0xf] %vm714_vm10, %v1407_v5  ;;  %716 = vst.msk [vmem:[#allocation2 + $0x8] sm:$0xf] %vm714_vm10, %v1407_v5 }
  0x41   : > { %718 = vst.msk [vmem:[#allocation2 + $0x4] sm:$0xf] %vm717_vm11, %v1407_v5  ;;  %719 = vst.msk [vmem:[#allocation2 + $0xc] sm:$0xf] %vm717_vm11, %v1407_v5  ;;  %vm738_vm13 = vcmask 31748   ;;  %vm732_vm14 = vcmask 31744  }
  0x42   : > { %vm739_vm15 = vmor %vm738_vm13, %vm737_vm12  ;;  %s1849_s23 = smov 126   ;;  %p1851_p13 = scmp.ne.s32.totalorder %s1845_s21, 0 }
  0x43   : > { %523 = vrot.lane.b32.xlu1 %v1253_v1, %s1400_s29  ;;  %575 = vrot.lane.b32.xlu0 %v1253_v1, %s1401_s20 }
  0x47   : > { %571 = vrot.lane.b32.xlu1 %v1254_v2, %s1401_s20  ;;  %569 = vrot.lane.b32.xlu0 %v1256_v3, %s1401_s20 }
  0x4b   : > { %519 = vrot.lane.b32.xlu1 %v1254_v2, %s1400_s29  ;;  %517 = vrot.lane.b32.xlu0 %v1256_v3, %s1400_s29 }
  0x4f   : > { %562 = vrot.lane.b32.xlu1 %v1253_v1, %s1402_s24  ;;  %560 = vrot.lane.b32.xlu0 %v1251_v0, %s1402_s24 }
  0x53   : > { %510 = vrot.lane.b32.xlu1 %v1253_v1, %s1837_s18  ;;  %508 = vrot.lane.b32.xlu0 %v1251_v0, %s1837_s18 }
  0x57   : > { %558 = vrot.lane.b32.xlu1 %v1254_v2, %s1402_s24  ;;  %556 = vrot.lane.b32.xlu0 %v1256_v3, %s1402_s24 }
  0x5b   : > { %506 = vrot.lane.b32.xlu1 %v1254_v2, %s1837_s18  ;;  %504 = vrot.lane.b32.xlu0 %v1256_v3, %s1837_s18  ;;  %s1662_s18 = scalar_lea.vmem [#allocation7], %s1840_s14 }
  0x5f   : > { %549 = vrot.lane.b32.xlu1 %v1253_v1, %s1404_s26  ;;  %547 = vrot.lane.b32.xlu0 %v1251_v0, %s1404_s26 }
  0x63   : > { %497 = vrot.lane.b32.xlu1 %v1253_v1, %s1835_s25  ;;  %495 = vrot.lane.b32.xlu0 %v1251_v0, %s1835_s25 }
  0x67   : > { %545 = vrot.lane.b32.xlu1 %v1254_v2, %s1404_s26  ;;  %543 = vrot.lane.b32.xlu0 %v1256_v3, %s1404_s26 }
  0x6b   : > { %493 = vrot.lane.b32.xlu1 %v1254_v2, %s1835_s25  ;;  %491 = vrot.lane.b32.xlu0 %v1256_v3, %s1835_s25  ;;  %s1411_s25 = smov 4  }
  0x6f   : > { %536 = vrot.lane.b32.xlu1 %v1253_v1, %s1406_s16  ;;  %534 = vrot.lane.b32.xlu0 %v1251_v0, %s1406_s16 }
  0x73   : > { %532 = vrot.lane.b32.xlu1 %v1254_v2, %s1406_s16  ;;  %530 = vrot.lane.b32.xlu0 %v1256_v3, %s1406_s16 }
  0x77   : > { %588 = vrot.lane.b32.xlu1 %v1253_v1, %s1408_s17  ;;  %586 = vrot.lane.b32.xlu0 %v1251_v0, %s1408_s17 }
  0x7b   : > { %584 = vrot.lane.b32.xlu1 %v1254_v2, %s1408_s17  ;;  %582 = vrot.lane.b32.xlu0 %v1256_v3, %s1408_s17 }
  0x7f   : > { %603 = vperm.xlu0 %1249, %v599_v6   ;;  %608 = vperm.xlu1 %1250, %v600_v7  }
  0xb1   : > { %v522_v8 = vpop.permute.xlu1 %521  ;;  %v574_v9 = vpop.permute.xlu0 %573 }
  0xb5   : > { %v524_v10 = vpop.permute.xlu1 %523  ;;  %v576_v11 = vpop.permute.xlu0 %575 }
  0xb6   : > { %v579_v12 = vsel %vm577_vm0, %v574_v9, %v576_v11  ;;  %v527_v13 = vsel %vm525_vm1, %v522_v8, %v524_v10 }
  0xb7   : > { %1149 = vmatprep.subr.bf16.mxu0 %v579_v12 }
  0xb8   : > { %1150 = vmatpush3.bf16.msra.mxu0 %v527_v13 }
  0xb9   : > { %v572_v14 = vpop.permute.xlu1 %571  ;;  %v570_v15 = vpop.permute.xlu0 %569 }
  0xba   : > { %v578_v16 = vsel %vm577_vm0, %v570_v15, %v572_v14 }
  0xbb   : > { %1151 = vmatprep.subr.bf16.mxu0 %v578_v16 }
  0xbd   : > { %v520_v17 = vpop.permute.xlu1 %519  ;;  %v518_v18 = vpop.permute.xlu0 %517 }
  0xbe   : > { %v526_v19 = vsel %vm525_vm1, %v518_v18, %v520_v17 }
  0xbf   : > { %1152 = vmatpush3.bf16.msra.mxu0 %v526_v19 }
  0xc1   : > { %v563_v20 = vpop.permute.xlu1 %562  ;;  %v561_v21 = vpop.permute.xlu0 %560 }
  0xc2   : > { %v566_v22 = vsel %vm564_vm2, %v561_v21, %v563_v20 }
  0xc3   : > { %1153 = vmatprep.subr.bf16.mxu0 %v566_v22 }
  0xc5   : > { %v511_v23 = vpop.permute.xlu1 %510  ;;  %v509_v24 = vpop.permute.xlu0 %508 }
  0xc6   : > { %v514_v25 = vsel %vm512_vm3, %v509_v24, %v511_v23  ;;  %v1269_v24 = vld [vmem:[%s1828_s6 + $0x4] ss:$8 sps:$4 sm:$0xff]  }
  0xc7   : > { %1154 = vmatpush3.bf16.msra.mxu0 %v514_v25 }
  0xc9   : > { %v559_v26 = vpop.permute.xlu1 %558  ;;  %v557_v27 = vpop.permute.xlu0 %556 }
  0xca   : > { %v565_v28 = vsel %vm564_vm2, %v557_v27, %v559_v26 }
  0xcb   : > { %1155 = vmatprep.subr.bf16.mxu0 %v565_v28 }
  0xcd   : > { %v507_v29 = vpop.permute.xlu1 %506  ;;  %v505_v30 = vpop.permute.xlu0 %504 }
  0xce   : > { %v513_v31 = vsel %vm512_vm3, %v505_v30, %v507_v29  ;;  %v813_v29 = vld [vmem:[%s1829_s7 + $0x8] sm:$0xff]  ;;  %v812_v30 = vld [vmem:[%s1829_s7] sm:$0xff] }
  0xcf   : > { %1156 = vmatpush3.bf16.msra.mxu0 %v513_v31  ;;  %v815_v31 = vld [vmem:[%s1829_s7 + $0x18] sm:$0xff] }
  0xd1   : > { %v550_v32 = vpop.permute.xlu1 %549  ;;  %v548_v33 = vpop.permute.xlu0 %547 }
  0xd2   : > { %v553_v34 = vsel %vm551_vm4, %v548_v33, %v550_v32  ;;  %v814_v32 = vld [vmem:[%s1829_s7 + $0x10] sm:$0xff] }
  0xd3   : > { %1157 = vmatprep.subr.bf16.mxu0 %v553_v34 }
  0xd5   : > { %v498_v35 = vpop.permute.xlu1 %497  ;;  %v496_v36 = vpop.permute.xlu0 %495 }
  0xd6   : > { %v501_v37 = vsel %vm499_vm5, %v496_v36, %v498_v35 }
  0xd7   : > { %1158 = vmatpush3.bf16.msra.mxu0 %v501_v37 }
  0xd9   : > { %v546_v38 = vpop.permute.xlu1 %545  ;;  %v544_v39 = vpop.permute.xlu0 %543 }
  0xda   : > { %v552_v40 = vsel %vm551_vm4, %v544_v39, %v546_v38 }
  0xdb   : > { %1159 = vmatprep.subr.bf16.mxu0 %v552_v40 }
  0xdd   : > { %v494_v41 = vpop.permute.xlu1 %493  ;;  %v492_v42 = vpop.permute.xlu0 %491 }
  0xde   : > { %v500_v43 = vsel %vm499_vm5, %v492_v42, %v494_v41 }
  0xdf   : > { %1160 = vmatpush3.bf16.msra.mxu0 %v500_v43 }
  0xe1   : > { %v537_v45 = vpop.permute.xlu1 %536  ;;  %v535_v46 = vpop.permute.xlu0 %534 }
  0xe2   : > { %v540_v47 = vsel %vm538_vm6, %v535_v46, %v537_v45 }
  0xe3   : > { %1161 = vmatprep.subr.bf16.mxu0 %v540_v47 }
  0xe4   : > { %1162 = vmatpush3.bf16.msra.mxu0 %v1257_v44 }
  0xe5   : > { %v533_v49 = vpop.permute.xlu1 %532  ;;  %v531_v50 = vpop.permute.xlu0 %530 }
  0xe6   : > { %v539_v51 = vsel %vm538_vm6, %v531_v50, %v533_v49 }
  0xe7   : > { %1163 = vmatprep.subr.bf16.mxu0 %v539_v51 }
  0xe8   : > { %1164 = vmatpush3.bf16.msra.mxu0 %v1258_v48 }
  0xe9   : > { %v589_v53 = vpop.permute.xlu1 %588  ;;  %v587_v54 = vpop.permute.xlu0 %586  ;;  %1174 = vmatprep.subr.bf16.mxu0 %v1409_v55 }
  0xea   : > { %v592_v56 = vsel %vm590_vm7, %v587_v54, %v589_v53 }
  0xeb   : > { %663 = vmatmul.mubr.bf16.vlgmr.msra.gmra.mxu0 %v1259_v52 }
  0xec   : > { %1175 = vmatpush3.bf16.msra.mxu0 %v592_v56  ;;  %1178 = vmatprep.mubr.msk.bf16.mxu0 %vm1410_vm8, %v1409_v55  ;;  %vm854_vm8 = vcmask 130048  }
  0xed   : > { %v585_v57 = vpop.permute.xlu1 %584  ;;  %v583_v58 = vpop.permute.xlu0 %582  ;;  %1176 = vmatprep.subr.bf16.mxu0 %v1409_v55  ;;  %1127 = vmatprep.mubr.msk.bf16.mxu1 %vm854_vm8, %v1269_v24 }
  0xee   : > { %v591_v59 = vsel %vm590_vm7, %v583_v58, %v585_v57  ;;  %v1267_v58 = vld [vmem:[%s1828_s6] ss:$8 sps:$4 sm:$0xff]  }
  0xf0   : > { %1177 = vmatpush3.bf16.msra.mxu0 %v591_v59  ;;  %v1270_v59 = vld [vmem:[%s1828_s6 + $0x14] ss:$8 sps:$4 sm:$0xff]  }
  0xf3   : > { %1179 = vmatmul.mubr.msk.bf16.vlgmr.msra.gmra.mxu0 %vm626_vm9, %v1262_v60  ;;  %v1272_v60 = vld [vmem:[%s1828_s6 + $0x10] ss:$8 sps:$4 sm:$0xff]  }
  0xfa   : > { %v604_v0 = vpop.permute.xlu0 %603  ;;  %v609_v6 = vpop.permute.xlu1 %608 }
 0x1ab   : > { %v1165_v61 = vpop.f32.mrf.mxu0 }
 0x1ad   : > { %v1166_v62 = vpop.f32.mrf.mxu0 }
 0x1ae   : > { %v1167_v63 = vadd.f32 %v1166_v62, %v1165_v61 }
 0x1af   : > { %v1168_v1 = vpop.f32.mrf.mxu0 }
 0x1b0   : > { %v665_v3 = vadd.f32 %v1167_v63, %v604_v0 }
 0x1b1   : > { %v1169_v2 = vpop.f32.mrf.mxu0 }
 0x1b2   : > { %v1170_v4 = vadd.f32 %v1169_v2, %v1168_v1 }
 0x1b3   : > { %v705_v7 = vpop.f32.mrf.mxu0 }
 0x1b4   : > { %v706_v8 = vadd.f32 %v705_v7, %v665_v3  ;;  %v668_v10 = vadd.f32 %v1170_v4, %v609_v6 }
 0x1b5   : > { %v1180_v9 = vpop.f32.mrf.mxu0 }
 0x1b6   : > { %712 = vst [vmem:[%s1662_s18] sm:$0xff] %v706_v8  ;;  %v1141_v11 = vpack.c.bf16 %v706_v8, %v706_v8 }
 0x1b7   : > { %v708_v12 = vpop.f32.mrf.mxu0 }
 0x1b8   : > { %v709_v13 = vadd.f32 %v708_v12, %v668_v10  ;;  %726 = vrot.lane.b32.xlu1 %v1141_v11, %s1411_s25 }
 0x1b9   : > { %v1181_v14 = vpop.f32.mrf.mxu0 }
 0x1ba   : > { %713 = vst [vmem:[%s1662_s18 + $0x8] sm:$0xff] %v709_v13  ;;  %v1142_v15 = vpack.c.bf16 %v709_v13, %v709_v13 }
 0x1bc   : > { %728 = vrot.lane.b32.xlu0 %v1142_v15, %s1411_s25 }
 0x22a   : > { %v727_v16 = vpop.permute.xlu1 %726 }
 0x22b   : > { %v730_v17 = vrot.slane %v727_v16, 4 }
 0x22d   : > { %v733_v18 = vsel %vm732_vm14, %v730_v17, %v727_v16 }
 0x22e   : > { %740 = vst.msk [vmem:[#allocation2] sm:$0xff] %vm739_vm15, %v733_v18  ;;  %v729_v19 = vpop.permute.xlu0 %728 }
 0x22f   : > { %v731_v20 = vrot.slane %v729_v19, 4 }
 0x231   : > { %v734_v21 = vsel %vm732_vm14, %v731_v20, %v729_v19 }
 0x232   : > { %741 = vst.msk [vmem:[#allocation2 + $0x8] sm:$0xff] %vm739_vm15, %v734_v21 }
 0x239   : > { %v1263_v22 = vld [vmem:[#allocation2 + $0x4] ss:$8 sps:$4 sm:$0xff]   ;;  %v1265_v23 = vld [vmem:[#allocation2] ss:$8 sps:$4 sm:$0xff]  }
 0x23a   : > { %798 = vrot.lane.b32.xlu0 %v1263_v22, %s1401_s20  ;;  %796 = vrot.lane.b32.xlu1 %v1265_v23, %s1401_s20  ;;  %v1266_v54 = vld [vmem:[#allocation2] ss:$8 sps:$4 sm:$0xff]  }
 0x23e   : > { %792 = vrot.lane.b32.xlu0 %v1263_v22, %s1402_s24  ;;  %790 = vrot.lane.b32.xlu1 %v1265_v23, %s1402_s24  ;;  %s1138_s24 = sshll.u32 %s1575_s28, 4 }
 0x23f   : > { %s416_s19 = scalar_lea.vmem %s1824_s2, %s1138_s24 }
 0x240   : > { %v442_v27 = vld [vmem:[%s416_s19 + $0x8] sm:$0xff]  ;;  %v441_v28 = vld [vmem:[%s416_s19] sm:$0xff]  ;;  %s922_s19 = scalar_lea.sflag [#allocation8], %s1563_s11 }
 0x242   : > { %786 = vrot.lane.b32.xlu0 %v1263_v22, %s1404_s26  ;;  %784 = vrot.lane.b32.xlu1 %v1265_v23, %s1404_s26  ;;  %s1850_s26 = smov 127  }
 0x246   : > { %780 = vrot.lane.b32.xlu0 %v1263_v22, %s1406_s16  ;;  %778 = vrot.lane.b32.xlu1 %v1265_v23, %s1406_s16 }
 0x24a   : > { %774 = vrot.lane.b32.xlu0 %v1263_v22, %s1400_s29  ;;  %772 = vrot.lane.b32.xlu1 %v1265_v23, %s1400_s29  ;;  %s411_s29 = scalar_lea.vmem %s1823_s1, %s1138_s24 }
 0x24b   : > { %v428_v25 = vld [vmem:[%s411_s29 + $0x8] sm:$0xff]  ;;  %v427_v26 = vld [vmem:[%s411_s29] sm:$0xff]  ;;  %s1839_s29 = sshll.u32 %s1487_s13, 8 }
 0x24c   : > { %s1740_s20 = scalar_lea.hbm %s1831_s9, %s1839_s29 }
 0x24e   : > { %768 = vrot.lane.b32.xlu0 %v1263_v22, %s1849_s23  ;;  %766 = vrot.lane.b32.xlu1 %v1265_v23, %s1849_s23 }
 0x252   : > { %762 = vrot.lane.b32.xlu0 %v1263_v22, %s1850_s26  ;;  %760 = vrot.lane.b32.xlu1 %v1265_v23, %s1850_s26  ;;  %s1412_s26 = smov [#allocation7]  }
 0x256   : > { %804 = vrot.lane.b32.xlu0 %v1263_v22, %s1408_s17  ;;  %802 = vrot.lane.b32.xlu1 %v1265_v23, %s1408_s17  ;;  %s951_s17 = sshll.u32 %s1662_s18, 4  ;;  %s1305_s18 = sshll.u32 %s1412_s26, 4  ;;  %s1733_s17 = int_to_ptr.vmem [resolvable:$true] %s951_s17  ;;  %s1306_s18 = int_to_ptr.vmem [resolvable:$false] %s1305_s18 }
 0x257   : > { %s1301_s28 = scalar_lea.vmem %s1733_s17, 256  ;;  %s1307_s16 = scalar_lea.vmem %s1306_s18, 512 }
 0x258   : > { %p1302_p12 = scmp.ne.s32.totalorder %s1733_s17, %s1301_s28  ;;  %p1308_p7 = scmp.lt.s32.totalorder %s1733_s17, %s1306_s18 }
 0x259   : > { %p1309_p8 = scmp.lt.s32.totalorder %s1307_s16, %s1301_s28 }
 0x25a   : > { %436 = vperm.xlu0 %1249, %v428_v25   ;;  %431 = vperm.xlu1 %1250, %v427_v26   ;;  %p1303_p4 = pnand %p1302_p12, %p1851_p13 }
 0x25b   : > { %p1310_p10 = por %p1309_p8, %p1308_p7 }
 0x25c   : > { %p1304_p5 = pneg %p1303_p4 }
 0x25e   : > { %450 = vperm.xlu0 %1249, %v442_v27   ;;  %445 = vperm.xlu1 %1250, %v441_v28   ;;  %p1311_p0 = pnand %p1310_p10, %p1304_p5 }
 0x262   : > { %823 = vperm.xlu0 %1249, %v813_v29   ;;  %818 = vperm.xlu1 %1250, %v812_v30  }
 0x266   : > { %833 = vperm.xlu0 %1249, %v815_v31   ;;  %828 = vperm.xlu1 %1250, %v814_v32  }
 0x2ac   : > { %v799_v33 = vpop.permute.xlu0 %798  ;;  %v797_v34 = vpop.permute.xlu1 %796 }
 0x2ad   : > { %v800_v35 = vsel %vm577_vm0, %v797_v34, %v799_v33 }
 0x2ae   : > { %862 = vmatpush1.bf16.msra.mxu1 %v800_v35 }
 0x2af   : > { %863 = vmatprep.subr.bf16.mxu1 %v1407_v5 }
 0x2b0   : > { %v793_v36 = vpop.permute.xlu0 %792  ;;  %v791_v37 = vpop.permute.xlu1 %790 }
 0x2b1   : > { %v794_v38 = vsel %vm564_vm2, %v791_v37, %v793_v36 }
 0x2b2   : > { %864 = vmatpush1.bf16.msra.mxu1 %v794_v38 }
 0x2b3   : > { %865 = vmatprep.subr.bf16.mxu1 %v1407_v5 }
 0x2b4   : > { %v787_v39 = vpop.permute.xlu0 %786  ;;  %v785_v40 = vpop.permute.xlu1 %784 }
 0x2b5   : > { %v788_v41 = vsel %vm551_vm4, %v785_v40, %v787_v39 }
 0x2b6   : > { %866 = vmatpush1.bf16.msra.mxu1 %v788_v41 }
 0x2b7   : > { %867 = vmatprep.subr.bf16.mxu1 %v1407_v5 }
 0x2b8   : > { %v781_v42 = vpop.permute.xlu0 %780  ;;  %v779_v43 = vpop.permute.xlu1 %778 }
 0x2b9   : > { %v782_v44 = vsel %vm538_vm6, %v779_v43, %v781_v42 }
 0x2ba   : > { %868 = vmatpush1.bf16.msra.mxu1 %v782_v44 }
 0x2bb   : > { %869 = vmatprep.subr.bf16.mxu1 %v1407_v5 }
 0x2bc   : > { %v775_v45 = vpop.permute.xlu0 %774  ;;  %v773_v46 = vpop.permute.xlu1 %772 }
 0x2bd   : > { %v776_v47 = vsel %vm525_vm1, %v773_v46, %v775_v45 }
 0x2be   : > { %870 = vmatpush1.bf16.msra.mxu1 %v776_v47 }
 0x2bf   : > { %871 = vmatprep.subr.bf16.mxu1 %v1407_v5 }
 0x2c0   : > { %v769_v48 = vpop.permute.xlu0 %768  ;;  %v767_v49 = vpop.permute.xlu1 %766 }
 0x2c1   : > { %v770_v50 = vsel %vm512_vm3, %v767_v49, %v769_v48 }
 0x2c2   : > { %872 = vmatpush1.bf16.msra.mxu1 %v770_v50 }
 0x2c3   : > { %873 = vmatprep.subr.bf16.mxu1 %v1407_v5 }
 0x2c4   : > { %v763_v51 = vpop.permute.xlu0 %762  ;;  %v761_v52 = vpop.permute.xlu1 %760 }
 0x2c5   : > { %v764_v53 = vsel %vm499_vm5, %v761_v52, %v763_v51 }
 0x2c6   : > { %874 = vmatpush1.bf16.msra.mxu1 %v764_v53 }
 0x2c7   : > { %875 = vmatprep.subr.bf16.mxu1 %v1407_v5 }
 0x2c8   : > { %v805_v55 = vpop.permute.xlu0 %804  ;;  %v803_v56 = vpop.permute.xlu1 %802 }
 0x2c9   : > { %v806_v57 = vsel %vm590_vm7, %v803_v56, %v805_v55 }
 0x2ca   : > { %876 = vmatpush1.bf16.msra.mxu1 %v1266_v54 }
 0x2cb   : > { %891 = vmatprep.subr.bf16.mxu1 %v1407_v5 }
 0x2ce   : > { %892 = vmatpush2.bf16.msra.mxu1 %v806_v57 }
 0x2d1   : > { %894 = vmatmul.mubr.bf16.vlgmr.msra.gmra.mxu1 %v1267_v58 }
 0x2d2   : > { %1128 = vmatprep.mubr.msk.bf16.mxu1 %vm854_vm8, %v1270_v59 }
 0x2d9   : > { %902 = vmatmul.mubr.bf16.gmra.mxu1 %v1272_v60 }
 0x2da   : > { %1314 = shalt.err (!%p1311_p0)
}
 0x2db   : > { %s1315_s25 = scalar_lea.hbm %s1740_s20, 256  ;;  %s1319_s26 = scalar_lea.hbm %s1831_s9, 512 }
 0x2dc   : > { %p1316_p2 = scmp.ne.s32.totalorder %s1740_s20, %s1315_s25  ;;  %p1320_p3 = scmp.lt.s32.totalorder %s1740_s20, %s1831_s9 }
 0x2dd   : > { %p1321_p6 = scmp.lt.s32.totalorder %s1319_s26, %s1315_s25 }
 0x2de   : > { %p1317_p9 = pnand %p1316_p2, %p1851_p13 }
 0x2df   : > { %p1322_p11 = por %p1321_p6, %p1320_p3 }
 0x2e0   : > { %p1318_p1 = pneg %p1317_p9 }
 0x2e2   : > { %p1323_p12 = pnand %p1322_p11, %p1318_p1 }
 0x2e4   : > { %1326 = shalt.err (!%p1323_p12)
}
 0x2e5   : > { %s1413_s28 = smov 128   ;;  %s1414_s18 = smov 8   ;;  %v432_v5 = vpop.permute.xlu1 %431  ;;  %v437_v61 = vpop.permute.xlu0 %436  ;;  %v1146_v63 = vld [vmem:[%s1567_s27] sm:$0xff]  }
 0x2e6   : > { %1185 = dma.vmem_to_hbm [thread:$0]  (%p1851_p13), %s1733_s17, 256, %s1740_s20, %s922_s19, %s1413_s28, %s1413_s28, %s1414_s18   ;;  %v1147_v2 = vunpack.c.l.bf16 %v1146_v63  ;;  %v1148_v7 = vunpack.c.h.bf16 %v1146_v63 }
 0x2e7   : > { %s1852_s27 = sshll.u32 %s1563_s11, 4  ;;  %s1853_s29 = sshll.u32 %s1487_s13, 8 }
 0x2e8   : > { %v439_v8 = vsub.f32 %v1147_v2, %v432_v5  ;;  %v440_v15 = vsub.f32 %v1148_v7, %v437_v61  ;;  %s399_s14 = scalar_lea.vmem [#allocation6], %s1852_s27  ;;  %s1778_s16 = scalar_lea.hbm %s1830_s8, %s1853_s29 }
 0x2e9   : > { %v446_v62 = vpop.permute.xlu1 %445  ;;  %v451_v0 = vpop.permute.xlu0 %450  ;;  %s935_s17 = sshll.u32 %s399_s14, 4  ;;  %s917_s25 = scalar_lea.sflag [#allocation5], %s1563_s11  ;;  %s1771_s17 = int_to_ptr.vmem [resolvable:$true] %s935_s17 }
 0x2ea   : > { %v453_v12 = vmul.f32 %v446_v62, %v439_v8  ;;  %v454_v20 = vmul.f32 %v451_v0, %v440_v15  ;;  %s1327_s24 = scalar_lea.vmem %s1771_s17, 256  ;;  %s1415_s23 = smov [#allocation6]  }
 0x2eb   : > { %p1328_p4 = scmp.ne.s32.totalorder %s1771_s17, %s1327_s24  ;;  %s1331_s26 = sshll.u32 %s1415_s23, 4  ;;  %s1332_s26 = int_to_ptr.vmem [resolvable:$false] %s1331_s26 }
 0x2ec   : > { %s1333_s27 = scalar_lea.vmem %s1332_s26, 512  ;;  %p1334_p8 = scmp.lt.s32.totalorder %s1771_s17, %s1332_s26 }
 0x2ed   : > { %v819_v3 = vpop.permute.xlu1 %818  ;;  %v824_v10 = vpop.permute.xlu0 %823  ;;  %p1329_p5 = pnand %p1328_p4, %p1851_p13  ;;  %p1335_p10 = scmp.lt.s32.totalorder %s1333_s27, %s1327_s24 }
 0x2ef   : > { %p1330_p7 = pneg %p1329_p5  ;;  %p1336_p0 = por %p1335_p10, %p1334_p8 }
 0x2f1   : > { %v829_v13 = vpop.permute.xlu1 %828  ;;  %v834_v22 = vpop.permute.xlu0 %833  ;;  %p1337_p2 = pnand %p1336_p0, %p1330_p7 }
 0x391   : > { %v895_v1 = vpop.f32.mrf.mxu1 }
 0x392   : > { %v896_v9 = vadd.f32 %v895_v1, %v819_v3 }
 0x393   : > { %v897_v4 = vpop.f32.mrf.mxu1 }
 0x394   : > { %v910_v16 = vmul.f32 %v896_v9, %v453_v12 }
 0x395   : > { %v898_v6 = vpop.f32.mrf.mxu1 }
 0x396   : > { %v899_v17 = vadd.f32 %v898_v6, %v824_v10 }
 0x397   : > { %v900_v11 = vpop.f32.mrf.mxu1 }
 0x398   : > { %v911_v24 = vmul.f32 %v899_v17, %v454_v20 }
 0x399   : > { %v903_v14 = vpop.f32.mrf.mxu1 }
 0x39a   : > { %v904_v18 = vadd.f32 %v903_v14, %v829_v13 }
 0x39b   : > { %v905_v19 = vpop.f32.mrf.mxu1 }
 0x39c   : > { %v912_v21 = vadd.f32 %v910_v16, %v904_v18 }
 0x39d   : > { %v906_v23 = vpop.f32.mrf.mxu1 }
 0x39e   : > { %914 = vst [vmem:[%s399_s14] sm:$0xff] %v912_v21  ;;  %v907_v25 = vadd.f32 %v906_v23, %v834_v22 }
 0x39f   : > { %v908_v26 = vpop.f32.mrf.mxu1 }
 0x3a0   : > { %v913_v27 = vadd.f32 %v911_v24, %v907_v25 }
 0x3a2   : > { %915 = vst [vmem:[%s399_s14 + $0x8] sm:$0xff] %v913_v27 }
 0x3a3   : > { %1340 = shalt.err (!%p1337_p2)
}
 0x3a4   : > { %s1341_s13 = scalar_lea.hbm %s1778_s16, 256  ;;  %s1345_s29 = scalar_lea.hbm %s1830_s8, 512 }
 0x3a5   : > { %p1342_p9 = scmp.ne.s32.totalorder %s1778_s16, %s1341_s13  ;;  %p1346_p6 = scmp.lt.s32.totalorder %s1778_s16, %s1830_s8 }
 0x3a6   : > { %p1347_p11 = scmp.lt.s32.totalorder %s1345_s29, %s1341_s13 }
 0x3a7   : > { %p1343_p1 = pnand %p1342_p9, %p1851_p13 }
 0x3a8   : > { %p1348_p12 = por %p1347_p11, %p1346_p6 }
 0x3a9   : > { %p1344_p3 = pneg %p1343_p1 }
 0x3ab   : > { %p1349_p4 = pnand %p1348_p12, %p1344_p3 }
 0x3ad   : > { %1352 = shalt.err (!%p1349_p4)
}
 0x3ae   : > { %1184 = dma.vmem_to_hbm [thread:$0]  (%p1851_p13), %s1771_s17, 256, %s1778_s16, %s917_s25, %s1413_s28, %s1413_s28, %s1414_s18  }
 0x3af PF: > { %s966_s24 = sand.u32 1, %s1383_s30   ;;  %p1854_p5 = scmp.ne.s32.totalorder %s1846_s22, 0 }
 0x3b0   : > { %p1855_p7 = scmp.ge.s32.totalorder %s1395_s12, 2  ;;  %s967_s23 = scalar_lea.sflag [#allocation5], %s966_s24 }
 0x3b2   : > { %p1193_p8 = pnand %p1855_p7, %p1854_p5 }
 0x3b4   : > { %p1194_p10 = pneg %p1193_p8 }
 0x3b6   : > { %1374 = dma.done.wait (%p1194_p10), %s967_s23, 256  }
 0x3b7   : > { %1376 = vsyncadd (%p1194_p10), %s967_s23, 4294967040  ;;  %s976_s26 = scalar_lea.sflag [#allocation8], %s966_s24 }
 0x3b8   : > { %1378 = dma.done.wait (%p1194_p10), %s976_s26, 256  }
 0x3b9   : > { %1380 = vsyncadd (%p1194_p10), %s976_s26, 4294967040  ;;  %s1856_s21 = sld [smem:[#allocation12_spill]]  ;;  %p26_p13 = scmp.ge.s32.totalorder %s1491_s15, 4  }
 0x3ba   : > { %s1857_s11 = sld [smem:[#allocation13_spill]]  ;;  %s1858_s30 = smov %s1387_s10 }
 0x3bb   : > { %s1860_s12 = smov %s1491_s15  ;;  %28 = sbr.rel (!%p26_p13) target bundleno = 7 (0x7), region = 123 }
 0x3bf   : > { %s1859_s10 = smov %s1856_s21 }
 0x3c0   :  { %981 = vsyncpa [#allocation4], 1 }
 0x3c1   :  { %983 = vsyncpa [#allocation4 + $0x1], 1 }
 0x3c2   :  { %984 = vsyncpa [#allocation5], 1 }
 0x3c3   :  { %986 = vsyncpa [#allocation5 + $0x1], 1 }
 0x3c4   :  { %987 = vsyncpa [#allocation8], 1 }
 0x3c5   :  { %989 = vsyncpa [#allocation8 + $0x1], 1 }

</bundles_post_ra>
